<compile_context>
chip_gen: v5e
topology: v5e:2x2
jax: 0.10.0
libtpu: 0.0.40
codegen_flags: <defaults>
</compile_context>

<pallas_src>
import functools

import jax
import jax.numpy as jnp
from jax.experimental import pallas as pl
from jax.experimental.pallas import tpu as pltpu


_VMEM = pl.BlockSpec(memory_space=pltpu.MemorySpace.VMEM)


# ---------------------------------------------------------------------------
# Fused Pallas kernel
# ---------------------------------------------------------------------------
def _gat_module_kernel(x_ref, adj_ref, ef_ref,
                       wl1_ref, bl1_ref, wr1_ref, br1_ref, we1_ref, att1_ref, b1_ref,
                       wl2_ref, bl2_ref, wr2_ref, br2_ref, we2_ref, att2_ref, b2_ref,
                       hmask_ref, fcw_ref, fcb_ref,
                       out_ref,
                       *, num_nodes, heads, out_ch, neg_slope):
    """Fused gat1 -> ELU -> gat2 -> ELU -> fc.

    x_ref:    [N, Fin]
    adj_ref:  [N, N]       adj[i, j] = 1 iff edge j -> i
    ef_ref:   [De, N*N]    lane-dense edge attrs; column i*N + j = attr of edge j -> i
    per GAT layer:
      wl/bl:  [Fin, HC], [1, HC]   lin_l (source transform)
      wr/br:  [Fin, HC], [1, HC]   lin_r (target transform)
      we:     [De, HC]             lin_edge (no bias)
      att:    [H, HC]              block rows: att[h, h*C+c] = a_h[c], zeros elsewhere
      bias:   [1, HC]
    hmask:    [H, HC]              hmask[h, h*C+c] = 1, zeros elsewhere (both layers)
    fcw/fcb:  [HC, OUT], [1, OUT]
    out_ref:  [N, OUT]
    """
    N, H = num_nodes, heads
    HC = heads * out_ch

    # Hoisted quantities, shared by both GAT layers (computed exactly once).
    mask = adj_ref[...] > 0.5
    mask_f = mask.astype(jnp.float32)
    ef_t = ef_ref[...].T                       # [N*N, De]; DMA stays lane-dense, tiny in-VMEM transpose
    hmask = hmask_ref[...]                     # [H, HC]

    def gatv2_elu(X, wl_ref, bl_ref, wr_ref, br_ref, we_ref, att_ref, bias_ref):
        xl = jnp.dot(X, wl_ref[...], preferred_element_type=jnp.float32) + bl_ref[...]  # [N, HC]
        xr = jnp.dot(X, wr_ref[...], preferred_element_type=jnp.float32) + br_ref[...]  # [N, HC]
        # lin_edge: one MXU dot per layer, no per-head reshapes.
        ee = jnp.dot(ef_t, we_ref[...], preferred_element_type=jnp.float32)             # [N*N, HC]
        ee = ee.reshape(N, N, HC)                                                       # [i, j, HC]

        # GATv2 message pre-activation for all heads at once, single LeakyReLU.
        s = xl[None, :, :] + xr[:, None, :] + ee                                        # [N, N, HC]
        s = jnp.where(s > 0, s, neg_slope * s)

        attf = att_ref[...]                      # [H, HC] block rows of the attention vectors
        out = jnp.zeros((N, HC), jnp.float32)
        for h in range(H):                       # static unroll over heads (H is small)
            # per-head score: lane reduction against a full-width, head-masked att row
            score = jnp.sum(s * attf[h].reshape(1, 1, HC), axis=2)                      # [N, N]
            # masked softmax over source nodes j
            score = jnp.where(mask, score, jnp.float32(-1e30))
            score = score - jnp.max(score, axis=1, keepdims=True)
            p = jnp.exp(score) * mask_f
            denom = jnp.maximum(jnp.sum(p, axis=1, keepdims=True), jnp.float32(1e-20))
            alpha = p * pl.reciprocal(denom, approx=True)                               # EUP slot
            # head-masked xl keeps lanes dense; the dot only populates head h's channel
            # block, and accumulating full-width [N, HC] avoids partial (masked) stores.
            out = out + jnp.dot(alpha, xl * hmask[h].reshape(1, HC),
                                preferred_element_type=jnp.float32)
        out = out + bias_ref[...]
        # ELU; exp argument clamped so the discarded branch never produces inf.
        return jnp.where(out > 0, out, jnp.exp(jnp.minimum(out, 0.0)) - 1.0)

    h1 = gatv2_elu(x_ref[...], wl1_ref, bl1_ref, wr1_ref, br1_ref, we1_ref, att1_ref, b1_ref)
    h2 = gatv2_elu(h1, wl2_ref, bl2_ref, wr2_ref, br2_ref, we2_ref, att2_ref, b2_ref)
    # final fc — the single store of the whole kernel
    out_ref[...] = (jnp.dot(h2, fcw_ref[...], preferred_element_type=jnp.float32)
                    + fcb_ref[...])


# ---------------------------------------------------------------------------
# Host-side helpers / wrapper
# ---------------------------------------------------------------------------
def _att_block_rows(att):
    """[H, C] -> [H, H*C]: row h holds att[h] in head h's channel block, zeros elsewhere."""
    h, c = att.shape
    return (jnp.eye(h, dtype=att.dtype)[:, :, None] * att[None, :, :]).reshape(h, h * c)


def gat_module_forward(x, adj, eattr_dense, p):
    n = x.shape[0]
    heads, hidden = p["heads"], p["hidden"]
    de = eattr_dense.shape[-1]
    hc = heads * hidden
    out_dim = p["fc_w"].shape[1]

    # Stage edge attrs lane-dense: [De, N*N], column i*N + j = attr of edge j -> i.
    ef = jnp.transpose(eattr_dense.reshape(n * n, de))          # [De, N*N]

    g1, g2 = p["gat1"], p["gat2"]
    att1 = _att_block_rows(g1["att"])                           # [H, HC]
    att2 = _att_block_rows(g2["att"])                           # [H, HC]
    hmask = jnp.repeat(jnp.eye(heads, dtype=jnp.float32), hidden, axis=1)   # [H, HC]

    kernel = functools.partial(_gat_module_kernel, num_nodes=n, heads=heads,
                               out_ch=hidden, neg_slope=0.2)
    return pl.pallas_call(
        kernel,
        out_shape=jax.ShapeDtypeStruct((n, out_dim), jnp.float32),
        in_specs=[_VMEM] * 20,
        out_specs=_VMEM,
    )(x, adj, ef,
      g1["wl"], g1["bl"], g1["wr"], g1["br"], g1["we"], att1, g1["bias"],
      g2["wl"], g2["bl"], g2["wr"], g2["br"], g2["we"], att2, g2["bias"],
      hmask, p["fc_w"], p["fc_b"])


# ---------------------------------------------------------------------------
# Pure-JAX reference (for correctness check)
# ---------------------------------------------------------------------------
def _gatv2_ref(x, adj, eattr_dense, pr, heads, out_ch, apply_elu=True):
    n = x.shape[0]
    xl = x @ pr["wl"] + pr["bl"]
    xr = x @ pr["wr"] + pr["br"]
    ee = eattr_dense.reshape(n * n, -1) @ pr["we"]
    mask = adj > 0.5
    outs = []
    for h in range(heads):
        c0, c1 = h * out_ch, (h + 1) * out_ch
        xl_h, xr_h = xl[:, c0:c1], xr[:, c0:c1]
        ee_h = ee[:, c0:c1].reshape(n, n, out_ch)
        s = xl_h[None, :, :] + xr_h[:, None, :] + ee_h
        s = jnp.where(s > 0, s, 0.2 * s)
        score = jnp.sum(s * pr["att"][h][None, None, :], axis=2)
        score = jnp.where(mask, score, -1e30)
        score = score - jnp.max(score, axis=1, keepdims=True)
        pw = jnp.exp(score) * mask.astype(jnp.float32)
        alpha = pw / jnp.sum(pw, axis=1, keepdims=True)
        outs.append(alpha @ xl_h)
    out = jnp.concatenate(outs, axis=1) + pr["bias"]
    if apply_elu:
        out = jnp.where(out > 0, out, jnp.exp(jnp.minimum(out, 0.0)) - 1.0)
    return out


def gat_module_ref(x, adj, eattr_dense, p):
    h1 = _gatv2_ref(x, adj, eattr_dense, p["gat1"], p["heads"], p["hidden"])
    h2 = _gatv2_ref(h1, adj, eattr_dense, p["gat2"], p["heads"], p["hidden"])
    return h2 @ p["fc_w"] + p["fc_b"]


# ---------------------------------------------------------------------------
# Parameter / input construction
# ---------------------------------------------------------------------------
def make_gat_params(key, in_dim, out_ch, heads, edge_dim):
    ks = jax.random.split(key, 6)
    hc = heads * out_ch
    g = lambda k, fan_in, shape: jax.random.normal(k, shape, jnp.float32) / jnp.sqrt(fan_in)
    return {
        "wl": g(ks[0], in_dim, (in_dim, hc)),
        "bl": 0.01 * jax.random.normal(ks[1], (1, hc), jnp.float32),
        "wr": g(ks[2], in_dim, (in_dim, hc)),
        "br": 0.01 * jax.random.normal(ks[3], (1, hc), jnp.float32),
        "we": g(ks[4], edge_dim, (edge_dim, hc)),
        "att": g(ks[5], out_ch, (heads, out_ch)),
        "bias": jnp.zeros((1, hc), jnp.float32),
    }


def densify_graph(num_nodes, edge_index, edge_attr, edge_dim):
    """Edge list -> dense adjacency + dense edge attrs, with PyG-style self loops
    (fill_value='mean': self-loop attr = mean of incoming edge attrs)."""
    src, dst = edge_index[0], edge_index[1]
    adj = jnp.zeros((num_nodes, num_nodes), jnp.float32).at[dst, src].set(1.0)
    eattr = jnp.zeros((num_nodes, num_nodes, edge_dim), jnp.float32).at[dst, src].set(edge_attr)
    deg = jnp.maximum(jnp.sum(adj, axis=1), 1.0)                      # incoming degree
    loop_attr = jnp.sum(eattr, axis=1) / deg[:, None]                 # scatter-mean per target
    idx = jnp.arange(num_nodes)
    eattr = eattr.at[idx, idx].set(loop_attr)
    adj = adj.at[idx, idx].set(1.0)
    return adj, eattr
    # TODO(synk): dense form collapses multi-edges between the same node pair;
    # the synthetic graph below has no duplicates so semantics match PyG exactly.


# ---------------------------------------------------------------------------
# Main
# ---------------------------------------------------------------------------
if __name__ == "__main__":
    # GATModule(in_channels=4, hidden_channels=8, last_layer_output=4, heads=2)
    N, IN_CH, HIDDEN, HEADS, OUT, EDGE_DIM = 8, 4, 8, 2, 4, 3

    key = jax.random.PRNGKey(0)
    kx, ke, k1, k2, kf = jax.random.split(key, 5)

    # node features  [N, in_channels]
    x = jax.random.normal(kx, (N, IN_CH), jnp.float32)

    # deterministic simple directed graph: i -> (i+1)%N and i -> (i+3)%N  (16 edges)
    src = jnp.concatenate([jnp.arange(N), jnp.arange(N)])
    dst = jnp.concatenate([(jnp.arange(N) + 1) % N, (jnp.arange(N) + 3) % N])
    edge_index = jnp.stack([src, dst]).astype(jnp.int32)              # [2, 16]
    edge_attr = jax.random.normal(ke, (edge_index.shape[1], EDGE_DIM), jnp.float32)

    adj, eattr_dense = densify_graph(N, edge_index, edge_attr, EDGE_DIM)

    params = {
        "heads": HEADS,
        "hidden": HIDDEN,
        "gat1": make_gat_params(k1, IN_CH, HIDDEN, HEADS, EDGE_DIM),
        "gat2": make_gat_params(k2, HIDDEN * HEADS, HIDDEN, HEADS, EDGE_DIM),
        "fc_w": jax.random.normal(kf, (HIDDEN * HEADS, OUT), jnp.float32)
                / jnp.sqrt(HIDDEN * HEADS),
        "fc_b": jnp.zeros((1, OUT), jnp.float32),
    }

    out = gat_module_forward(x, adj, eattr_dense, params)
    out = jax.block_until_ready(out)

    ref = gat_module_ref(x, adj, eattr_dense, params)
    assert out.shape == (N, OUT), out.shape
    # tolerance accounts for the approx (EUP) reciprocal in the softmax normalization
    assert jnp.allclose(out, ref, atol=2e-3, rtol=2e-3), "mismatch vs JAX reference"

    print("KERNEL_OK")
</pallas_src>

<mosaic_0001>
module attributes {stable_mosaic.version = 11 : i64} {
  func.func @_gat_module_kernel(%arg0: memref<8x4xf32, #tpu.memory_space<vmem>>, %arg1: memref<8x8xf32, #tpu.memory_space<vmem>>, %arg2: memref<3x64xf32, #tpu.memory_space<vmem>>, %arg3: memref<4x16xf32, #tpu.memory_space<vmem>>, %arg4: memref<1x16xf32, #tpu.memory_space<vmem>>, %arg5: memref<4x16xf32, #tpu.memory_space<vmem>>, %arg6: memref<1x16xf32, #tpu.memory_space<vmem>>, %arg7: memref<3x16xf32, #tpu.memory_space<vmem>>, %arg8: memref<2x16xf32, #tpu.memory_space<vmem>>, %arg9: memref<1x16xf32, #tpu.memory_space<vmem>>, %arg10: memref<16x16xf32, #tpu.memory_space<vmem>>, %arg11: memref<1x16xf32, #tpu.memory_space<vmem>>, %arg12: memref<16x16xf32, #tpu.memory_space<vmem>>, %arg13: memref<1x16xf32, #tpu.memory_space<vmem>>, %arg14: memref<3x16xf32, #tpu.memory_space<vmem>>, %arg15: memref<2x16xf32, #tpu.memory_space<vmem>>, %arg16: memref<1x16xf32, #tpu.memory_space<vmem>>, %arg17: memref<2x16xf32, #tpu.memory_space<vmem>>, %arg18: memref<16x4xf32, #tpu.memory_space<vmem>>, %arg19: memref<1x4xf32, #tpu.memory_space<vmem>>, %arg20: memref<8x4xf32, #tpu.memory_space<vmem>>) attributes {dimension_semantics = [], scalar_prefetch = 0 : i64, scratch_operands = 0 : i64, tpu.core_type = #tpu.core_type<tc>} {
    %c0 = arith.constant 0 : index
    %c0_0 = arith.constant 0 : index
    %0 = vector.load %arg1[%c0, %c0_0] : memref<8x8xf32, #tpu.memory_space<vmem>>, vector<8x8xf32>
    %cst = arith.constant 5.000000e-01 : f32
    %1 = vector.broadcast %cst : f32 to vector<8x8xf32>
    %2 = arith.cmpf ogt, %0, %1 : vector<8x8xf32>
    %3 = arith.extui %2 : vector<8x8xi1> to vector<8x8xi32>
    %4 = arith.sitofp %3 : vector<8x8xi32> to vector<8x8xf32>
    %c0_1 = arith.constant 0 : index
    %c0_2 = arith.constant 0 : index
    %5 = vector.load %arg2[%c0_1, %c0_2] : memref<3x64xf32, #tpu.memory_space<vmem>>, vector<3x64xf32>
    %6 = tpu.transpose %5, [1, 0] : vector<3x64xf32> -> vector<64x3xf32>
    %c0_3 = arith.constant 0 : index
    %c0_4 = arith.constant 0 : index
    %7 = vector.load %arg17[%c0_3, %c0_4] : memref<2x16xf32, #tpu.memory_space<vmem>>, vector<2x16xf32>
    %c0_5 = arith.constant 0 : index
    %c0_6 = arith.constant 0 : index
    %8 = vector.load %arg0[%c0_5, %c0_6] : memref<8x4xf32, #tpu.memory_space<vmem>>, vector<8x4xf32>
    %c0_7 = arith.constant 0 : index
    %c0_8 = arith.constant 0 : index
    %9 = vector.load %arg3[%c0_7, %c0_8] : memref<4x16xf32, #tpu.memory_space<vmem>>, vector<4x16xf32>
    %cst_9 = arith.constant dense<0.000000e+00> : vector<8x16xf32>
    %10 = tpu.matmul %8, %9, %cst_9 {dimension_numbers = #tpu.dot_dimension_numbers<[1], [0], [0], [1], [0, 0, 1, 1], [], []>} : vector<8x4xf32>, vector<4x16xf32>, vector<8x16xf32> -> vector<8x16xf32>
    %c0_10 = arith.constant 0 : index
    %c0_11 = arith.constant 0 : index
    %11 = vector.load %arg4[%c0_10, %c0_11] : memref<1x16xf32, #tpu.memory_space<vmem>>, vector<1x16xf32>
    %12 = vector.broadcast %11 : vector<1x16xf32> to vector<8x16xf32>
    %13 = arith.addf %10, %12 : vector<8x16xf32>
    %c0_12 = arith.constant 0 : index
    %c0_13 = arith.constant 0 : index
    %14 = vector.load %arg5[%c0_12, %c0_13] : memref<4x16xf32, #tpu.memory_space<vmem>>, vector<4x16xf32>
    %cst_14 = arith.constant dense<0.000000e+00> : vector<8x16xf32>
    %15 = tpu.matmul %8, %14, %cst_14 {dimension_numbers = #tpu.dot_dimension_numbers<[1], [0], [0], [1], [0, 0, 1, 1], [], []>} : vector<8x4xf32>, vector<4x16xf32>, vector<8x16xf32> -> vector<8x16xf32>
    %c0_15 = arith.constant 0 : index
    %c0_16 = arith.constant 0 : index
    %16 = vector.load %arg6[%c0_15, %c0_16] : memref<1x16xf32, #tpu.memory_space<vmem>>, vector<1x16xf32>
    %17 = vector.broadcast %16 : vector<1x16xf32> to vector<8x16xf32>
    %18 = arith.addf %15, %17 : vector<8x16xf32>
    %c0_17 = arith.constant 0 : index
    %c0_18 = arith.constant 0 : index
    %19 = vector.load %arg7[%c0_17, %c0_18] : memref<3x16xf32, #tpu.memory_space<vmem>>, vector<3x16xf32>
    %cst_19 = arith.constant dense<0.000000e+00> : vector<64x16xf32>
    %20 = tpu.matmul %6, %19, %cst_19 {dimension_numbers = #tpu.dot_dimension_numbers<[1], [0], [0], [1], [0, 0, 1, 1], [], []>} : vector<64x3xf32>, vector<3x16xf32>, vector<64x16xf32> -> vector<64x16xf32>
    %21 = vector.shape_cast %20 : vector<64x16xf32> to vector<8x8x16xf32>
    %22 = vector.shape_cast %13 : vector<8x16xf32> to vector<1x8x16xf32>
    %23 = vector.shape_cast %18 : vector<8x16xf32> to vector<8x1x16xf32>
    %24 = vector.broadcast %22 : vector<1x8x16xf32> to vector<8x8x16xf32>
    %25 = vector.broadcast %23 : vector<8x1x16xf32> to vector<8x8x16xf32>
    %26 = arith.addf %24, %25 : vector<8x8x16xf32>
    %27 = arith.addf %26, %21 : vector<8x8x16xf32>
    %cst_20 = arith.constant 0.000000e+00 : f32
    %28 = vector.broadcast %cst_20 : f32 to vector<8x8x16xf32>
    %29 = arith.cmpf ogt, %27, %28 : vector<8x8x16xf32>
    %cst_21 = arith.constant 2.000000e-01 : f32
    %30 = vector.broadcast %cst_21 : f32 to vector<8x8x16xf32>
    %31 = arith.mulf %30, %27 : vector<8x8x16xf32>
    %32 = arith.select %29, %27, %31 : vector<8x8x16xi1>, vector<8x8x16xf32>
    %c0_22 = arith.constant 0 : index
    %c0_23 = arith.constant 0 : index
    %33 = vector.load %arg8[%c0_22, %c0_23] : memref<2x16xf32, #tpu.memory_space<vmem>>, vector<2x16xf32>
    %cst_24 = arith.constant 0.000000e+00 : f32
    %34 = vector.broadcast %cst_24 : f32 to vector<8x16xf32>
    %35 = vector.extract_strided_slice %33 {offsets = [0, 0], sizes = [1, 16], strides = [1, 1]} : vector<2x16xf32> to vector<1x16xf32>
    %36 = vector.shape_cast %35 : vector<1x16xf32> to vector<16xf32>
    %37 = vector.shape_cast %36 : vector<16xf32> to vector<1x1x16xf32>
    %38 = vector.broadcast %37 : vector<1x1x16xf32> to vector<8x8x16xf32>
    %39 = arith.mulf %32, %38 : vector<8x8x16xf32>
    %cst_25 = arith.constant dense<0.000000e+00> : vector<8x8xf32>
    %40 = vector.multi_reduction <add>, %39, %cst_25 [2] : vector<8x8x16xf32> to vector<8x8xf32>
    %cst_26 = arith.constant -1.000000e+30 : f32
    %41 = vector.broadcast %cst_26 : f32 to vector<8x8xf32>
    %42 = arith.select %2, %40, %41 : vector<8x8xi1>, vector<8x8xf32>
    %cst_27 = arith.constant dense<0xFF800000> : vector<8xf32>
    %43 = vector.multi_reduction <maximumf>, %42, %cst_27 [1] : vector<8x8xf32> to vector<8xf32>
    %44 = vector.shape_cast %43 : vector<8xf32> to vector<8x1xf32>
    %45 = vector.broadcast %44 : vector<8x1xf32> to vector<8x8xf32>
    %46 = arith.subf %42, %45 : vector<8x8xf32>
    %47 = math.exp %46 : vector<8x8xf32>
    %48 = arith.mulf %47, %4 : vector<8x8xf32>
    %cst_28 = arith.constant dense<0.000000e+00> : vector<8xf32>
    %49 = vector.multi_reduction <add>, %48, %cst_28 [1] : vector<8x8xf32> to vector<8xf32>
    %50 = vector.shape_cast %49 : vector<8xf32> to vector<8x1xf32>
    %cst_29 = arith.constant 9.99999968E-21 : f32
    %51 = vector.broadcast %cst_29 : f32 to vector<8x1xf32>
    %52 = arith.maximumf %50, %51 : vector<8x1xf32>
    %53 = tpu.reciprocal %52 {approx = true} : vector<8x1xf32> -> vector<8x1xf32>
    %54 = vector.broadcast %53 : vector<8x1xf32> to vector<8x8xf32>
    %55 = arith.mulf %48, %54 : vector<8x8xf32>
    %56 = vector.extract_strided_slice %7 {offsets = [0, 0], sizes = [1, 16], strides = [1, 1]} : vector<2x16xf32> to vector<1x16xf32>
    %57 = vector.shape_cast %56 : vector<1x16xf32> to vector<16xf32>
    %58 = vector.shape_cast %57 : vector<16xf32> to vector<1x16xf32>
    %59 = vector.broadcast %58 : vector<1x16xf32> to vector<8x16xf32>
    %60 = arith.mulf %13, %59 : vector<8x16xf32>
    %cst_30 = arith.constant dense<0.000000e+00> : vector<8x16xf32>
    %61 = tpu.matmul %55, %60, %cst_30 {dimension_numbers = #tpu.dot_dimension_numbers<[1], [0], [0], [1], [0, 0, 1, 1], [], []>} : vector<8x8xf32>, vector<8x16xf32>, vector<8x16xf32> -> vector<8x16xf32>
    %62 = arith.addf %34, %61 : vector<8x16xf32>
    %63 = vector.extract_strided_slice %33 {offsets = [1, 0], sizes = [1, 16], strides = [1, 1]} : vector<2x16xf32> to vector<1x16xf32>
    %64 = vector.shape_cast %63 : vector<1x16xf32> to vector<16xf32>
    %65 = vector.shape_cast %64 : vector<16xf32> to vector<1x1x16xf32>
    %66 = vector.broadcast %65 : vector<1x1x16xf32> to vector<8x8x16xf32>
    %67 = arith.mulf %32, %66 : vector<8x8x16xf32>
    %cst_31 = arith.constant dense<0.000000e+00> : vector<8x8xf32>
    %68 = vector.multi_reduction <add>, %67, %cst_31 [2] : vector<8x8x16xf32> to vector<8x8xf32>
    %cst_32 = arith.constant -1.000000e+30 : f32
    %69 = vector.broadcast %cst_32 : f32 to vector<8x8xf32>
    %70 = arith.select %2, %68, %69 : vector<8x8xi1>, vector<8x8xf32>
    %cst_33 = arith.constant dense<0xFF800000> : vector<8xf32>
    %71 = vector.multi_reduction <maximumf>, %70, %cst_33 [1] : vector<8x8xf32> to vector<8xf32>
    %72 = vector.shape_cast %71 : vector<8xf32> to vector<8x1xf32>
    %73 = vector.broadcast %72 : vector<8x1xf32> to vector<8x8xf32>
    %74 = arith.subf %70, %73 : vector<8x8xf32>
    %75 = math.exp %74 : vector<8x8xf32>
    %76 = arith.mulf %75, %4 : vector<8x8xf32>
    %cst_34 = arith.constant dense<0.000000e+00> : vector<8xf32>
    %77 = vector.multi_reduction <add>, %76, %cst_34 [1] : vector<8x8xf32> to vector<8xf32>
    %78 = vector.shape_cast %77 : vector<8xf32> to vector<8x1xf32>
    %cst_35 = arith.constant 9.99999968E-21 : f32
    %79 = vector.broadcast %cst_35 : f32 to vector<8x1xf32>
    %80 = arith.maximumf %78, %79 : vector<8x1xf32>
    %81 = tpu.reciprocal %80 {approx = true} : vector<8x1xf32> -> vector<8x1xf32>
    %82 = vector.broadcast %81 : vector<8x1xf32> to vector<8x8xf32>
    %83 = arith.mulf %76, %82 : vector<8x8xf32>
    %84 = vector.extract_strided_slice %7 {offsets = [1, 0], sizes = [1, 16], strides = [1, 1]} : vector<2x16xf32> to vector<1x16xf32>
    %85 = vector.shape_cast %84 : vector<1x16xf32> to vector<16xf32>
    %86 = vector.shape_cast %85 : vector<16xf32> to vector<1x16xf32>
    %87 = vector.broadcast %86 : vector<1x16xf32> to vector<8x16xf32>
    %88 = arith.mulf %13, %87 : vector<8x16xf32>
    %cst_36 = arith.constant dense<0.000000e+00> : vector<8x16xf32>
    %89 = tpu.matmul %83, %88, %cst_36 {dimension_numbers = #tpu.dot_dimension_numbers<[1], [0], [0], [1], [0, 0, 1, 1], [], []>} : vector<8x8xf32>, vector<8x16xf32>, vector<8x16xf32> -> vector<8x16xf32>
    %90 = arith.addf %62, %89 : vector<8x16xf32>
    %c0_37 = arith.constant 0 : index
    %c0_38 = arith.constant 0 : index
    %91 = vector.load %arg9[%c0_37, %c0_38] : memref<1x16xf32, #tpu.memory_space<vmem>>, vector<1x16xf32>
    %92 = vector.broadcast %91 : vector<1x16xf32> to vector<8x16xf32>
    %93 = arith.addf %90, %92 : vector<8x16xf32>
    %cst_39 = arith.constant 0.000000e+00 : f32
    %94 = vector.broadcast %cst_39 : f32 to vector<8x16xf32>
    %95 = arith.cmpf ogt, %93, %94 : vector<8x16xf32>
    %cst_40 = arith.constant 0.000000e+00 : f32
    %96 = vector.broadcast %cst_40 : f32 to vector<8x16xf32>
    %97 = arith.minimumf %93, %96 : vector<8x16xf32>
    %98 = math.exp %97 : vector<8x16xf32>
    %cst_41 = arith.constant 1.000000e+00 : f32
    %99 = vector.broadcast %cst_41 : f32 to vector<8x16xf32>
    %100 = arith.subf %98, %99 : vector<8x16xf32>
    %101 = arith.select %95, %93, %100 : vector<8x16xi1>, vector<8x16xf32>
    %c0_42 = arith.constant 0 : index
    %c0_43 = arith.constant 0 : index
    %102 = vector.load %arg10[%c0_42, %c0_43] : memref<16x16xf32, #tpu.memory_space<vmem>>, vector<16x16xf32>
    %cst_44 = arith.constant dense<0.000000e+00> : vector<8x16xf32>
    %103 = tpu.matmul %101, %102, %cst_44 {dimension_numbers = #tpu.dot_dimension_numbers<[1], [0], [0], [1], [0, 0, 1, 1], [], []>} : vector<8x16xf32>, vector<16x16xf32>, vector<8x16xf32> -> vector<8x16xf32>
    %c0_45 = arith.constant 0 : index
    %c0_46 = arith.constant 0 : index
    %104 = vector.load %arg11[%c0_45, %c0_46] : memref<1x16xf32, #tpu.memory_space<vmem>>, vector<1x16xf32>
    %105 = vector.broadcast %104 : vector<1x16xf32> to vector<8x16xf32>
    %106 = arith.addf %103, %105 : vector<8x16xf32>
    %c0_47 = arith.constant 0 : index
    %c0_48 = arith.constant 0 : index
    %107 = vector.load %arg12[%c0_47, %c0_48] : memref<16x16xf32, #tpu.memory_space<vmem>>, vector<16x16xf32>
    %cst_49 = arith.constant dense<0.000000e+00> : vector<8x16xf32>
    %108 = tpu.matmul %101, %107, %cst_49 {dimension_numbers = #tpu.dot_dimension_numbers<[1], [0], [0], [1], [0, 0, 1, 1], [], []>} : vector<8x16xf32>, vector<16x16xf32>, vector<8x16xf32> -> vector<8x16xf32>
    %c0_50 = arith.constant 0 : index
    %c0_51 = arith.constant 0 : index
    %109 = vector.load %arg13[%c0_50, %c0_51] : memref<1x16xf32, #tpu.memory_space<vmem>>, vector<1x16xf32>
    %110 = vector.broadcast %109 : vector<1x16xf32> to vector<8x16xf32>
    %111 = arith.addf %108, %110 : vector<8x16xf32>
    %c0_52 = arith.constant 0 : index
    %c0_53 = arith.constant 0 : index
    %112 = vector.load %arg14[%c0_52, %c0_53] : memref<3x16xf32, #tpu.memory_space<vmem>>, vector<3x16xf32>
    %cst_54 = arith.constant dense<0.000000e+00> : vector<64x16xf32>
    %113 = tpu.matmul %6, %112, %cst_54 {dimension_numbers = #tpu.dot_dimension_numbers<[1], [0], [0], [1], [0, 0, 1, 1], [], []>} : vector<64x3xf32>, vector<3x16xf32>, vector<64x16xf32> -> vector<64x16xf32>
    %114 = vector.shape_cast %113 : vector<64x16xf32> to vector<8x8x16xf32>
    %115 = vector.shape_cast %106 : vector<8x16xf32> to vector<1x8x16xf32>
    %116 = vector.shape_cast %111 : vector<8x16xf32> to vector<8x1x16xf32>
    %117 = vector.broadcast %115 : vector<1x8x16xf32> to vector<8x8x16xf32>
    %118 = vector.broadcast %116 : vector<8x1x16xf32> to vector<8x8x16xf32>
    %119 = arith.addf %117, %118 : vector<8x8x16xf32>
    %120 = arith.addf %119, %114 : vector<8x8x16xf32>
    %cst_55 = arith.constant 0.000000e+00 : f32
    %121 = vector.broadcast %cst_55 : f32 to vector<8x8x16xf32>
    %122 = arith.cmpf ogt, %120, %121 : vector<8x8x16xf32>
    %cst_56 = arith.constant 2.000000e-01 : f32
    %123 = vector.broadcast %cst_56 : f32 to vector<8x8x16xf32>
    %124 = arith.mulf %123, %120 : vector<8x8x16xf32>
    %125 = arith.select %122, %120, %124 : vector<8x8x16xi1>, vector<8x8x16xf32>
    %c0_57 = arith.constant 0 : index
    %c0_58 = arith.constant 0 : index
    %126 = vector.load %arg15[%c0_57, %c0_58] : memref<2x16xf32, #tpu.memory_space<vmem>>, vector<2x16xf32>
    %cst_59 = arith.constant 0.000000e+00 : f32
    %127 = vector.broadcast %cst_59 : f32 to vector<8x16xf32>
    %128 = vector.extract_strided_slice %126 {offsets = [0, 0], sizes = [1, 16], strides = [1, 1]} : vector<2x16xf32> to vector<1x16xf32>
    %129 = vector.shape_cast %128 : vector<1x16xf32> to vector<16xf32>
    %130 = vector.shape_cast %129 : vector<16xf32> to vector<1x1x16xf32>
    %131 = vector.broadcast %130 : vector<1x1x16xf32> to vector<8x8x16xf32>
    %132 = arith.mulf %125, %131 : vector<8x8x16xf32>
    %cst_60 = arith.constant dense<0.000000e+00> : vector<8x8xf32>
    %133 = vector.multi_reduction <add>, %132, %cst_60 [2] : vector<8x8x16xf32> to vector<8x8xf32>
    %cst_61 = arith.constant -1.000000e+30 : f32
    %134 = vector.broadcast %cst_61 : f32 to vector<8x8xf32>
    %135 = arith.select %2, %133, %134 : vector<8x8xi1>, vector<8x8xf32>
    %cst_62 = arith.constant dense<0xFF800000> : vector<8xf32>
    %136 = vector.multi_reduction <maximumf>, %135, %cst_62 [1] : vector<8x8xf32> to vector<8xf32>
    %137 = vector.shape_cast %136 : vector<8xf32> to vector<8x1xf32>
    %138 = vector.broadcast %137 : vector<8x1xf32> to vector<8x8xf32>
    %139 = arith.subf %135, %138 : vector<8x8xf32>
    %140 = math.exp %139 : vector<8x8xf32>
    %141 = arith.mulf %140, %4 : vector<8x8xf32>
    %cst_63 = arith.constant dense<0.000000e+00> : vector<8xf32>
    %142 = vector.multi_reduction <add>, %141, %cst_63 [1] : vector<8x8xf32> to vector<8xf32>
    %143 = vector.shape_cast %142 : vector<8xf32> to vector<8x1xf32>
    %cst_64 = arith.constant 9.99999968E-21 : f32
    %144 = vector.broadcast %cst_64 : f32 to vector<8x1xf32>
    %145 = arith.maximumf %143, %144 : vector<8x1xf32>
    %146 = tpu.reciprocal %145 {approx = true} : vector<8x1xf32> -> vector<8x1xf32>
    %147 = vector.broadcast %146 : vector<8x1xf32> to vector<8x8xf32>
    %148 = arith.mulf %141, %147 : vector<8x8xf32>
    %149 = vector.extract_strided_slice %7 {offsets = [0, 0], sizes = [1, 16], strides = [1, 1]} : vector<2x16xf32> to vector<1x16xf32>
    %150 = vector.shape_cast %149 : vector<1x16xf32> to vector<16xf32>
    %151 = vector.shape_cast %150 : vector<16xf32> to vector<1x16xf32>
    %152 = vector.broadcast %151 : vector<1x16xf32> to vector<8x16xf32>
    %153 = arith.mulf %106, %152 : vector<8x16xf32>
    %cst_65 = arith.constant dense<0.000000e+00> : vector<8x16xf32>
    %154 = tpu.matmul %148, %153, %cst_65 {dimension_numbers = #tpu.dot_dimension_numbers<[1], [0], [0], [1], [0, 0, 1, 1], [], []>} : vector<8x8xf32>, vector<8x16xf32>, vector<8x16xf32> -> vector<8x16xf32>
    %155 = arith.addf %127, %154 : vector<8x16xf32>
    %156 = vector.extract_strided_slice %126 {offsets = [1, 0], sizes = [1, 16], strides = [1, 1]} : vector<2x16xf32> to vector<1x16xf32>
    %157 = vector.shape_cast %156 : vector<1x16xf32> to vector<16xf32>
    %158 = vector.shape_cast %157 : vector<16xf32> to vector<1x1x16xf32>
    %159 = vector.broadcast %158 : vector<1x1x16xf32> to vector<8x8x16xf32>
    %160 = arith.mulf %125, %159 : vector<8x8x16xf32>
    %cst_66 = arith.constant dense<0.000000e+00> : vector<8x8xf32>
    %161 = vector.multi_reduction <add>, %160, %cst_66 [2] : vector<8x8x16xf32> to vector<8x8xf32>
    %cst_67 = arith.constant -1.000000e+30 : f32
    %162 = vector.broadcast %cst_67 : f32 to vector<8x8xf32>
    %163 = arith.select %2, %161, %162 : vector<8x8xi1>, vector<8x8xf32>
    %cst_68 = arith.constant dense<0xFF800000> : vector<8xf32>
    %164 = vector.multi_reduction <maximumf>, %163, %cst_68 [1] : vector<8x8xf32> to vector<8xf32>
    %165 = vector.shape_cast %164 : vector<8xf32> to vector<8x1xf32>
    %166 = vector.broadcast %165 : vector<8x1xf32> to vector<8x8xf32>
    %167 = arith.subf %163, %166 : vector<8x8xf32>
    %168 = math.exp %167 : vector<8x8xf32>
    %169 = arith.mulf %168, %4 : vector<8x8xf32>
    %cst_69 = arith.constant dense<0.000000e+00> : vector<8xf32>
    %170 = vector.multi_reduction <add>, %169, %cst_69 [1] : vector<8x8xf32> to vector<8xf32>
    %171 = vector.shape_cast %170 : vector<8xf32> to vector<8x1xf32>
    %cst_70 = arith.constant 9.99999968E-21 : f32
    %172 = vector.broadcast %cst_70 : f32 to vector<8x1xf32>
    %173 = arith.maximumf %171, %172 : vector<8x1xf32>
    %174 = tpu.reciprocal %173 {approx = true} : vector<8x1xf32> -> vector<8x1xf32>
    %175 = vector.broadcast %174 : vector<8x1xf32> to vector<8x8xf32>
    %176 = arith.mulf %169, %175 : vector<8x8xf32>
    %177 = vector.extract_strided_slice %7 {offsets = [1, 0], sizes = [1, 16], strides = [1, 1]} : vector<2x16xf32> to vector<1x16xf32>
    %178 = vector.shape_cast %177 : vector<1x16xf32> to vector<16xf32>
    %179 = vector.shape_cast %178 : vector<16xf32> to vector<1x16xf32>
    %180 = vector.broadcast %179 : vector<1x16xf32> to vector<8x16xf32>
    %181 = arith.mulf %106, %180 : vector<8x16xf32>
    %cst_71 = arith.constant dense<0.000000e+00> : vector<8x16xf32>
    %182 = tpu.matmul %176, %181, %cst_71 {dimension_numbers = #tpu.dot_dimension_numbers<[1], [0], [0], [1], [0, 0, 1, 1], [], []>} : vector<8x8xf32>, vector<8x16xf32>, vector<8x16xf32> -> vector<8x16xf32>
    %183 = arith.addf %155, %182 : vector<8x16xf32>
    %c0_72 = arith.constant 0 : index
    %c0_73 = arith.constant 0 : index
    %184 = vector.load %arg16[%c0_72, %c0_73] : memref<1x16xf32, #tpu.memory_space<vmem>>, vector<1x16xf32>
    %185 = vector.broadcast %184 : vector<1x16xf32> to vector<8x16xf32>
    %186 = arith.addf %183, %185 : vector<8x16xf32>
    %cst_74 = arith.constant 0.000000e+00 : f32
    %187 = vector.broadcast %cst_74 : f32 to vector<8x16xf32>
    %188 = arith.cmpf ogt, %186, %187 : vector<8x16xf32>
    %cst_75 = arith.constant 0.000000e+00 : f32
    %189 = vector.broadcast %cst_75 : f32 to vector<8x16xf32>
    %190 = arith.minimumf %186, %189 : vector<8x16xf32>
    %191 = math.exp %190 : vector<8x16xf32>
    %cst_76 = arith.constant 1.000000e+00 : f32
    %192 = vector.broadcast %cst_76 : f32 to vector<8x16xf32>
    %193 = arith.subf %191, %192 : vector<8x16xf32>
    %194 = arith.select %188, %186, %193 : vector<8x16xi1>, vector<8x16xf32>
    %c0_77 = arith.constant 0 : index
    %c0_78 = arith.constant 0 : index
    %195 = vector.load %arg18[%c0_77, %c0_78] : memref<16x4xf32, #tpu.memory_space<vmem>>, vector<16x4xf32>
    %cst_79 = arith.constant dense<0.000000e+00> : vector<8x4xf32>
    %196 = tpu.matmul %194, %195, %cst_79 {dimension_numbers = #tpu.dot_dimension_numbers<[1], [0], [0], [1], [0, 0, 1, 1], [], []>} : vector<8x16xf32>, vector<16x4xf32>, vector<8x4xf32> -> vector<8x4xf32>
    %c0_80 = arith.constant 0 : index
    %c0_81 = arith.constant 0 : index
    %197 = vector.load %arg19[%c0_80, %c0_81] : memref<1x4xf32, #tpu.memory_space<vmem>>, vector<1x4xf32>
    %198 = vector.broadcast %197 : vector<1x4xf32> to vector<8x4xf32>
    %199 = arith.addf %196, %198 : vector<8x4xf32>
    %c0_82 = arith.constant 0 : index
    %c0_83 = arith.constant 0 : index
    %200 = vector.load %arg20[%c0_82, %c0_83] : memref<8x4xf32, #tpu.memory_space<vmem>>, vector<8x4xf32>
    tpu.vector_store %arg20[%c0_82, %c0_83], %199 {strides = array<i32>} : memref<8x4xf32, #tpu.memory_space<vmem>>, vector<8x4xf32>,
    return
  }
}

</mosaic_0001>

<bundles_post_ra>
// kernel: tpu_custom_call.1
= control target key start
LH: loop header
LB: loop body
LE: loop exit
PB: predicated region body
PF: predicated region fallthrough
CT: control target
= control target key end

     0   :  { %s1887_s0 = inlined_call_operand.vmem [shape: f32[8,4], index: 0, kind: input, shape index: {}]   ;;  %s1888_s1 = inlined_call_operand.hbm [shape: f32[8,8], index: 1, kind: input, shape index: {}]   ;;  %s1889_s2 = inlined_call_operand.vmem [shape: f32[3,64], index: 2, kind: input, shape index: {}]   ;;  %s1890_s3 = inlined_call_operand.hbm [shape: f32[4,16], index: 3, kind: input, shape index: {}]   ;;  %s1891_s4 = inlined_call_operand.hbm [shape: f32[1,16], index: 4, kind: input, shape index: {}]   ;;  %s1892_s5 = inlined_call_operand.hbm [shape: f32[4,16], index: 5, kind: input, shape index: {}]   ;;  %s1893_s6 = inlined_call_operand.hbm [shape: f32[1,16], index: 6, kind: input, shape index: {}]   ;;  %s1894_s7 = inlined_call_operand.hbm [shape: f32[3,16], index: 7, kind: input, shape index: {}]   ;;  %s1895_s8 = inlined_call_operand.hbm [shape: f32[2,16], index: 8, kind: input, shape index: {}]   ;;  %s1896_s9 = inlined_call_operand.hbm [shape: f32[1,16], index: 9, kind: input, shape index: {}]   ;;  %s1897_s10 = inlined_call_operand.vmem [shape: f32[16,16], index: 10, kind: input, shape index: {}]   ;;  %s1898_s11 = inlined_call_operand.hbm [shape: f32[1,16], index: 11, kind: input, shape index: {}]   ;;  %s1899_s12 = inlined_call_operand.vmem [shape: f32[16,16], index: 12, kind: input, shape index: {}]   ;;  %s1900_s13 = inlined_call_operand.hbm [shape: f32[1,16], index: 13, kind: input, shape index: {}]   ;;  %s1901_s14 = inlined_call_operand.vmem [shape: f32[3,16], index: 14, kind: input, shape index: {}]   ;;  %s1902_s15 = inlined_call_operand.vmem [shape: f32[2,16], index: 15, kind: input, shape index: {}]   ;;  %s1903_s16 = inlined_call_operand.hbm [shape: f32[1,16], index: 16, kind: input, shape index: {}]   ;;  %s1904_s17 = inlined_call_operand.vmem [shape: f32[2,16], index: 17, kind: input, shape index: {}]   ;;  %s1905_s18 = inlined_call_operand.vmem [shape: f32[16,4], index: 18, kind: input, shape index: {}]   ;;  %s1906_s19 = inlined_call_operand.vmem [shape: f32[1,4], index: 19, kind: input, shape index: {}]   ;;  %s1907_s20 = inlined_call_operand.vmem [shape: f32[8,4], index: 20, kind: output, shape index: {}]  }
   0x1   :  { %1908 = sst [smem:[#allocation25_spill]] %s1887_s0 }
   0x2   :  { %1909 = sst [smem:[#allocation26_spill]] %s1888_s1 }
   0x3   :  { %1910 = sst [smem:[#allocation27_spill]] %s1889_s2 }
   0x4   :  { %1911 = sst [smem:[#allocation28_spill]] %s1890_s3 }
   0x5   :  { %1912 = sst [smem:[#allocation29_spill]] %s1891_s4 }
   0x6   :  { %25 = vsyncpa [#allocation3], 0 }
   0x7   :  { %26 = vsyncpa [#allocation5], 0 }
   0x8   :  { %27 = vsyncpa [#allocation8], 0 }
   0x9   :  { %28 = vsyncpa [#allocation11], 0 }
   0xa   :  { %29 = vsyncpa [#allocation14], 0  ;;  %s1913_s23 = sld [smem:[#allocation28_spill]] }
  0x10   :  { %s51_s24 = sshll.u32 %s1913_s23, 4  ;;  %s52_s24 = int_to_ptr.hbm [resolvable:$true] %s51_s24 }
  0x11   :  { %30 = vsyncpa [#allocation17], 0  ;;  %s1419_s2 = smov [#allocation4]   ;;  %s73_s27 = sshll.u32 %s1892_s5, 4  ;;  %s74_s27 = int_to_ptr.hbm [resolvable:$true] %s73_s27 }
  0x12   :  { %s53_s25 = sshll.u32 %s1419_s2, 4  ;;  %s1420_s28 = smov [#allocation7]   ;;  %s54_s25 = int_to_ptr.vmem [resolvable:$true] %s53_s25 }
  0x13   :  { %56 = dma.hbm_to_vmem [thread:$0]  %s52_s24, 64, %s54_s25, [#allocation5]  }
  0x14   :  { %s75_s4 = sshll.u32 %s1420_s28, 4  ;;  %s95_s0 = sshll.u32 %s1894_s7, 4  ;;  %s76_s4 = int_to_ptr.vmem [resolvable:$true] %s75_s4  ;;  %s96_s0 = int_to_ptr.hbm [resolvable:$true] %s95_s0 }
  0x15   :  { %78 = dma.hbm_to_vmem [thread:$0]  %s74_s27, 64, %s76_s4, [#allocation8]  }
  0x16   :  { %s117_s22 = sshll.u32 %s1896_s9, 4  ;;  %s1421_s23 = smov [#allocation10]   ;;  %s118_s22 = int_to_ptr.hbm [resolvable:$true] %s117_s22 }
  0x17   :  { %s97_s2 = sshll.u32 %s1421_s23, 4  ;;  %s1422_s5 = smov [#allocation13]   ;;  %s98_s2 = int_to_ptr.vmem [resolvable:$true] %s97_s2 }
  0x18   :  { %100 = dma.hbm_to_vmem [thread:$0]  %s96_s0, 64, %s98_s2, [#allocation11]  }
  0x19   :  { %s119_s24 = sshll.u32 %s1422_s5, 4  ;;  %s143_s26 = sshll.u32 %s1900_s13, 4  ;;  %s120_s24 = int_to_ptr.vmem [resolvable:$true] %s119_s24  ;;  %s144_s26 = int_to_ptr.hbm [resolvable:$true] %s143_s26 }
  0x1a   :  { %122 = dma.hbm_to_vmem [thread:$0]  %s118_s22, 16, %s120_s24, [#allocation14]  }
  0x1b   :  { %s1914_s28 = sld [smem:[#allocation26_spill]]  ;;  %s1423_s29 = smov [#allocation16]  }
  0x1c   :  { %s145_s9 = sshll.u32 %s1423_s29, 4  ;;  %s1424_s30 = smov [#allocation2]   ;;  %s146_s9 = int_to_ptr.vmem [resolvable:$true] %s145_s9 }
  0x1d   :  { %148 = dma.hbm_to_vmem [thread:$0]  %s144_s26, 16, %s146_s9, [#allocation17]  }
  0x1e   :  { %s40_s0 = sshll.u32 %s1424_s30, 4  ;;  %s1915_s23 = sld [smem:[#allocation29_spill]]  ;;  %s41_s0 = int_to_ptr.vmem [resolvable:$true] %s40_s0 }
  0x1f   :  { %s84_s5 = sshll.u32 %s1893_s6, 4  ;;  %s1425_s24 = smov [#allocation6]   ;;  %s85_s5 = int_to_ptr.hbm [resolvable:$true] %s84_s5 }
  0x20   :  { %s64_s25 = sshll.u32 %s1425_s24, 4  ;;  %s1426_s3 = smov [#allocation9]   ;;  %s65_s25 = int_to_ptr.vmem [resolvable:$true] %s64_s25 }
  0x21   :  { %s38_s4 = sshll.u32 %s1914_s28, 4  ;;  %s86_s26 = sshll.u32 %s1426_s3, 4  ;;  %s39_s4 = int_to_ptr.hbm [resolvable:$true] %s38_s4  ;;  %s87_s26 = int_to_ptr.vmem [resolvable:$true] %s86_s26 }
  0x22   :  { %43 = dma.hbm_to_vmem [thread:$0]  %s39_s4, 128, %s41_s0, [#allocation3]  }
  0x23   :  { %s106_s28 = sshll.u32 %s1895_s8, 4  ;;  %s130_s9 = sshll.u32 %s1898_s11, 4  ;;  %s107_s28 = int_to_ptr.hbm [resolvable:$true] %s106_s28  ;;  %s131_s9 = int_to_ptr.hbm [resolvable:$true] %s130_s9 }
  0x24   :  { %s62_s2 = sshll.u32 %s1915_s23, 4  ;;  %s1427_s30 = smov [#allocation12]   ;;  %s63_s2 = int_to_ptr.hbm [resolvable:$true] %s62_s2 }
  0x25   :  { %67 = dma.hbm_to_vmem [thread:$0]  %s63_s2, 16, %s65_s25, [#allocation5]  }
  0x26   :  { %89 = dma.hbm_to_vmem [thread:$0]  %s85_s5, 16, %s87_s26, [#allocation8]  }
  0x27   :  { %s108_s6 = sshll.u32 %s1427_s30, 4  ;;  %s1428_s0 = smov [#allocation15]   ;;  %s109_s6 = int_to_ptr.vmem [resolvable:$true] %s108_s6 }
  0x28   :  { %111 = dma.hbm_to_vmem [thread:$0]  %s107_s28, 32, %s109_s6, [#allocation11]  }
  0x29   :  { %s132_s21 = sshll.u32 %s1428_s0, 4  ;;  %s158_s2 = sshll.u32 %s1903_s16, 4  ;;  %s133_s21 = int_to_ptr.vmem [resolvable:$true] %s132_s21  ;;  %s159_s2 = int_to_ptr.hbm [resolvable:$true] %s158_s2 }
  0x2a   :  { %135 = dma.hbm_to_vmem [thread:$0]  %s131_s9, 16, %s133_s21, [#allocation14]  }
  0x2b   :  { %s1429_s8 = smov [#allocation18]  }
  0x2c   :  { %s160_s13 = sshll.u32 %s1429_s8, 4  ;;  %s161_s13 = int_to_ptr.vmem [resolvable:$true] %s160_s13 }
  0x2d   :  { %163 = dma.hbm_to_vmem [thread:$0]  %s159_s2, 16, %s161_s13, [#allocation17]  }
  0x2e   :  { %1407 = dma.done.wait [#allocation3], 128  }
  0x2f   :  { %1408 = vsyncadd [#allocation3], 4294967168 }
  0x30   :  { %1409 = dma.done.wait [#allocation5], 80  }
  0x31   :  { %1410 = vsyncadd [#allocation5], 4294967216 }
  0x32   :  { %1411 = dma.done.wait [#allocation8], 80  }
  0x33   :  { %1412 = vsyncadd [#allocation8], 4294967216 }
  0x34   :  { %1413 = dma.done.wait [#allocation11], 96  }
  0x35   :  { %1414 = vsyncadd [#allocation11], 4294967200 }
  0x36   :  { %1415 = dma.done.wait [#allocation14], 32  }
  0x37   :  { %1416 = vsyncadd [#allocation14], 4294967264 }
  0x38   :  { %1417 = dma.done.wait [#allocation17], 32  }
  0x39   :  { %1418 = vsyncadd [#allocation17], 4294967264  ;;  %vm262_vm0 = vcmask 1043456   ;;  %vm258_vm1 = vcmask 31744   ;;  %s1916_s22 = sld [smem:[#allocation27_spill]]  ;;  %vm340_vm2 = vcmask 1042432  }
  0x3a   :  { %v253_v1 = vld [vmem:[#allocation4] sm:$0xf]  ;;  %s1917_s25 = sld [smem:[#allocation25_spill]]  ;;  %v286_v3 = vld [vmem:[#allocation7] sm:$0xf]  ;;  %vm315_vm3 = vcmask 23552  }
  0x3b   :  { %1071 = vmatpush.msk.msra.mxu1 %vm262_vm0, %v253_v1  ;;  %v314_v4 = vld [vmem:[#allocation10] sm:$0x7]  ;;  %v1116_v13 = vld [vmem:[#allocation6] ss:$0 sm:$0xff]  ;;  %v1614_v15 = vld [vmem:[%s1904_s17] sm:$0x3] }
  0x3c   :  { %1102 = vmatpush.msk.msra.mxu2 %vm340_vm2, %v314_v4  ;;  %v605_v17 = vperm.slane %v1614_v15, 1  ;;  %v532_v18 = vperm.slane %v1614_v15, 0  ;;  %v1117_v21 = vld [vmem:[#allocation9] ss:$0 sm:$0xff]  ;;  %v449_v26 = vld [vmem:[#allocation12] sm:$0x3] }
  0x3d   :  { %1073 = vmatpush.msk.msrb.mxu1 %vm262_vm0, %v286_v3  ;;  %v1630_v29 = vperm.slane %v449_v26, 1  ;;  %v1632_v30 = vperm.slane %v449_v26, 0  ;;  %vm459_vm5 = vcmask 130048   ;;  %vm502_vm13 = vcmask 1041409   ;;  %v828_v15 = vld [vmem:[%s1902_s15] sm:$0x3] }
  0x3e   :  { %vm504_vm14 = vcmask 1042434   ;;  %vm506_vm15 = vcmask 1043459   ;;  %vm508_vm0 = vcmask 1044484  }
  0x3f   :  { %v218_v0 = vld [vmem:[%s1916_s22] sm:$0x7] }
  0x40   :  { %v252_v2 = vld [vmem:[%s1917_s25] sm:$0xff]  ;;  %219 = vxpose.xlu0.b32.start.end [1/1] (short) (narrow) %v218_v0, 64 }
  0x41   :  { %1072 = vmatmul.msk.f32.vlgmr.msra.gmra.mxu1 %vm258_vm1, %v252_v2 }
  0x42   :  { %1075 = vmatpush.msk.msra.mxu1 %vm340_vm2, %v314_v4 }
  0x49   :  { %1074 = vmatmul.msk.f32.vlgmr.msrb.gmra.mxu1 %vm258_vm1, %v252_v2 }
  0xbe   :  { %v283_v14 = vpop.f32.mrf.mxu1 }
  0xbf   :  { %v1616_v16 = vadd.f32 %v1116_v13, %v283_v14 }
  0xc1   :  { %v606_v19 = vmul.f32 %v605_v17, %v1616_v16  ;;  %v533_v20 = vmul.f32 %v532_v18, %v1616_v16 }
  0xc3   :  { %625 = vmatpush.msra.mxu3 %v606_v19  ;;  %648 = vmatpush.msra.mxu0 %v533_v20 }
  0xc6   :  { %v311_v22 = vpop.f32.mrf.mxu1 }
  0xc7   :  { %v1626_v23 = vadd.f32 %v1117_v21, %v311_v22 }
  0xc9   :  { %v393_v24 = vperm.slane %v1626_v23, 0  ;;  %v386_v33 = vrot.slane %v1626_v23, 1  ;;  %v387_v40 = vrot.slane %v1626_v23, 2  ;;  %v388_v49 = vrot.slane %v1626_v23, 3 }
  0xca   :  { %v389_v60 = vrot.slane %v1626_v23, 4  ;;  %v390_v19 = vrot.slane %v1626_v23, 5 }
  0xcb   :  { %v409_v25 = vadd.f32 %v393_v24, %v1616_v16  ;;  %v394_v38 = vperm.slane %v386_v33, 0  ;;  %v395_v44 = vperm.slane %v387_v40, 0  ;;  %v396_v55 = vperm.slane %v388_v49, 0 }
  0xcc   :  { %v397_v2 = vperm.slane %v389_v60, 0  ;;  %v398_v26 = vperm.slane %v390_v19, 0 }
  0xcd   :  { %v410_v39 = vadd.f32 %v394_v38, %v1616_v16  ;;  %v411_v48 = vadd.f32 %v395_v44, %v1616_v16  ;;  %v412_v59 = vadd.f32 %v396_v55, %v1616_v16 }
  0xce   :  { %v413_v14 = vadd.f32 %v397_v2, %v1616_v16 }
  0xe4   :  { %v1579_v5 = vpop.trf.xlu0 }
  0xe5   :  { %1076 = vmatmul.msk.f32.vlgmr.msra.gmra.mxu1 %vm315_vm3, %v1579_v5 }
  0xec   :  { %v1583_v6 = vpop.trf.xlu0 }
  0xed   :  { %1077 = vmatmul.msk.f32.vlgmr.msra.gmra.mxu2 %vm315_vm3, %v1583_v6 }
  0xf4   :  { %v1587_v7 = vpop.trf.xlu0 }
  0xf5   :  { %1078 = vmatmul.msk.f32.gmra.mxu2 %vm315_vm3, %v1587_v7 }
  0xfc   :  { %v1591_v8 = vpop.trf.xlu0 }
  0xfd   :  { %1079 = vmatmul.msk.f32.gmra.mxu2 %vm315_vm3, %v1591_v8 }
 0x104   :  { %v1595_v9 = vpop.trf.xlu0 }
 0x105   :  { %1080 = vmatmul.msk.f32.gmra.mxu2 %vm315_vm3, %v1595_v9 }
 0x10c   :  { %v1599_v10 = vpop.trf.xlu0 }
 0x10d   :  { %1081 = vmatmul.msk.f32.gmra.mxu2 %vm315_vm3, %v1599_v10 }
 0x114   :  { %v1603_v11 = vpop.trf.xlu0 }
 0x115   :  { %1082 = vmatmul.msk.f32.gmra.mxu2 %vm315_vm3, %v1603_v11 }
 0x11c   :  { %v1607_v12 = vpop.trf.xlu0 }
 0x11d   :  { %1083 = vmatmul.msk.f32.gmra.mxu2 %vm315_vm3, %v1607_v12 }
 0x162   :  { %v361_v27 = vpop.f32.mrf.mxu1 }
 0x163   :  { %v417_v28 = vadd.f32 %v409_v25, %v361_v27 }
 0x165   :  { %vm425_vm4 = vcmp.gt.f32.partialorder %v417_v28, 0.0  ;;  %v433_v31 = vmul.f32 0.2, %v417_v28 }
 0x167   :  { %v441_v32 = vsel %vm425_vm4, %v417_v28, %v433_v31  ;;  %v414_v31 = vadd.f32 %v398_v26, %v1616_v16  ;;  %vm510_vm4 = vcmask 1045509  }
 0x168   :  { %v535_v34 = vmul.f32 %v1630_v29, %v441_v32  ;;  %v451_v35 = vmul.f32 %v1632_v30, %v441_v32  ;;  %v391_v32 = vrot.slane %v1626_v23, 6 }
 0x16a   :  { %v543_v36 = vsel %vm459_vm5, %v535_v34, 0.0  ;;  %v460_v37 = vsel %vm459_vm5, %v451_v35, 0.0 }
 0x16b   :  { %544 = vadd.xlane.f32.xlu0 %v543_v36  ;;  %461 = vadd.xlane.f32.xlu1 %v460_v37  ;;  %v399_v37 = vperm.slane %v391_v32, 0 }
 0x170   :  { %v364_v41 = vpop.f32.mrf.mxu2 }
 0x171   :  { %v418_v42 = vadd.f32 %v410_v39, %v364_v41  ;;  %v415_v41 = vadd.f32 %v399_v37, %v1616_v16 }
 0x173   :  { %vm426_vm6 = vcmp.gt.f32.partialorder %v418_v42, 0.0  ;;  %v434_v43 = vmul.f32 0.2, %v418_v42 }
 0x175   :  { %v442_v45 = vsel %vm426_vm6, %v418_v42, %v434_v43  ;;  %v392_v42 = vrot.slane %v1626_v23, 7  ;;  %vm512_vm6 = vcmask 1046534  }
 0x176   :  { %v536_v46 = vmul.f32 %v1630_v29, %v442_v45  ;;  %v452_v47 = vmul.f32 %v1632_v30, %v442_v45 }
 0x178   :  { %v367_v50 = vpop.f32.mrf.mxu2  ;;  %v546_v51 = vsel %vm459_vm5, %v536_v46, 0.0  ;;  %v463_v52 = vsel %vm459_vm5, %v452_v47, 0.0 }
 0x179   :  { %v419_v53 = vadd.f32 %v411_v48, %v367_v50  ;;  %547 = vadd.xlane.f32.xlu1 %v546_v51  ;;  %464 = vadd.xlane.f32.xlu2 %v463_v52  ;;  %v400_v48 = vperm.slane %v392_v42, 0 }
 0x17b   :  { %vm427_vm7 = vcmp.gt.f32.partialorder %v419_v53, 0.0  ;;  %v435_v54 = vmul.f32 0.2, %v419_v53  ;;  %v416_v52 = vadd.f32 %v400_v48, %v1616_v16 }
 0x17d   :  { %v443_v56 = vsel %vm427_vm7, %v419_v53, %v435_v54  ;;  %vm514_vm7 = vcmask 1047559  }
 0x17e   :  { %v537_v57 = vmul.f32 %v1630_v29, %v443_v56  ;;  %v453_v58 = vmul.f32 %v1632_v30, %v443_v56 }
 0x180   :  { %v370_v61 = vpop.f32.mrf.mxu2  ;;  %v549_v62 = vsel %vm459_vm5, %v537_v57, 0.0  ;;  %v466_v63 = vsel %vm459_vm5, %v453_v58, 0.0 }
 0x181   :  { %v420_v0 = vadd.f32 %v412_v59, %v370_v61  ;;  %550 = vadd.xlane.f32.xlu1 %v549_v62  ;;  %467 = vadd.xlane.f32.xlu2 %v466_v63 }
 0x183   :  { %vm428_vm8 = vcmp.gt.f32.partialorder %v420_v0, 0.0  ;;  %v436_v1 = vmul.f32 0.2, %v420_v0 }
 0x185   :  { %v444_v3 = vsel %vm428_vm8, %v420_v0, %v436_v1 }
 0x186   :  { %v538_v4 = vmul.f32 %v1630_v29, %v444_v3  ;;  %v454_v13 = vmul.f32 %v1632_v30, %v444_v3 }
 0x188   :  { %v373_v20 = vpop.f32.mrf.mxu2  ;;  %v552_v21 = vsel %vm459_vm5, %v538_v4, 0.0  ;;  %v469_v22 = vsel %vm459_vm5, %v454_v13, 0.0 }
 0x189   :  { %v421_v24 = vadd.f32 %v413_v14, %v373_v20  ;;  %553 = vadd.xlane.f32.xlu2 %v552_v21  ;;  %470 = vadd.xlane.f32.xlu1 %v469_v22 }
 0x18b   :  { %vm429_vm9 = vcmp.gt.f32.partialorder %v421_v24, 0.0  ;;  %v437_v25 = vmul.f32 0.2, %v421_v24 }
 0x18d   :  { %v445_v27 = vsel %vm429_vm9, %v421_v24, %v437_v25  ;;  %vm518_vm9 = vcmask 64512  }
 0x18e   :  { %v539_v28 = vmul.f32 %v1630_v29, %v445_v27  ;;  %v455_v38 = vmul.f32 %v1632_v30, %v445_v27 }
 0x190   :  { %v376_v33 = vpop.f32.mrf.mxu2  ;;  %v555_v34 = vsel %vm459_vm5, %v539_v28, 0.0  ;;  %v472_v44 = vsel %vm459_vm5, %v455_v38, 0.0 }
 0x191   :  { %v422_v35 = vadd.f32 %v414_v31, %v376_v33  ;;  %556 = vadd.xlane.f32.xlu2 %v555_v34 }
 0x193   :  { %vm430_vm10 = vcmp.gt.f32.partialorder %v422_v35, 0.0  ;;  %v438_v36 = vmul.f32 0.2, %v422_v35 }
 0x195   :  { %v446_v39 = vsel %vm430_vm10, %v422_v35, %v438_v36  ;;  %v1691_v36 = vld [vmem:[#allocation2] sm:$0xff] }
 0x196   :  { %v540_v40 = vmul.f32 %v1630_v29, %v446_v39  ;;  %v456_v49 = vmul.f32 %v1632_v30, %v446_v39  ;;  %vm215_vm8 = vcmp.gt.f32.partialorder %v1691_v36, 0.5 }
 0x198   :  { %v379_v43 = vpop.f32.mrf.mxu2  ;;  %v558_v45 = vsel %vm459_vm5, %v540_v40, 0.0  ;;  %v475_v23 = vsel %vm459_vm5, %v456_v49, 0.0 }
 0x199   :  { %v423_v46 = vadd.f32 %v415_v41, %v379_v43  ;;  %473 = vadd.xlane.f32.xlu2 %v472_v44  ;;  %559 = vadd.xlane.f32.xlu1 %v558_v45 }
 0x19b   :  { %vm431_vm11 = vcmp.gt.f32.partialorder %v423_v46, 0.0  ;;  %v439_v47 = vmul.f32 0.2, %v423_v46 }
 0x19d   :  { %v447_v50 = vsel %vm431_vm11, %v423_v46, %v439_v47 }
 0x19e   :  { %v541_v51 = vmul.f32 %v1630_v29, %v447_v50  ;;  %v457_v57 = vmul.f32 %v1632_v30, %v447_v50 }
 0x1a0   :  { %v382_v53 = vpop.f32.mrf.mxu2  ;;  %v561_v54 = vsel %vm459_vm5, %v541_v51, 0.0  ;;  %v478_v61 = vsel %vm459_vm5, %v457_v57, 0.0 }
 0x1a1   :  { %v424_v55 = vadd.f32 %v416_v52, %v382_v53  ;;  %476 = vadd.xlane.f32.xlu1 %v475_v23  ;;  %562 = vadd.xlane.f32.xlu2 %v561_v54 }
 0x1a3   :  { %vm432_vm12 = vcmp.gt.f32.partialorder %v424_v55, 0.0  ;;  %v440_v56 = vmul.f32 0.2, %v424_v55 }
 0x1a5   :  { %v448_v58 = vsel %vm432_vm12, %v424_v55, %v440_v56 }
 0x1a6   :  { %v542_v59 = vmul.f32 %v1630_v29, %v448_v58  ;;  %v458_v60 = vmul.f32 %v1632_v30, %v448_v58  ;;  %v492_v30 = vlaneseq }
 0x1a8   :  { %v564_v16 = vsel %vm459_vm5, %v542_v59, 0.0  ;;  %v481_v62 = vsel %vm459_vm5, %v458_v60, 0.0  ;;  %v1680_v20 = vand.u32 127, %v492_v30 }
 0x1a9   :  { %479 = vadd.xlane.f32.xlu2 %v478_v61  ;;  %565 = vadd.xlane.f32.xlu1 %v564_v16 }
 0x1b1   :  { %482 = vadd.xlane.f32.xlu1 %v481_v62 }
 0x1de   :  { %v462_v63 = vpop.xlane.xlu1 %461  ;;  %v545_v21 = vpop.xlane.xlu0 %544 }
 0x1df   :  { %v575_v27 = vperm.slane %v545_v21, %v1680_v20  ;;  %v494_v45 = vperm.slane %v462_v63, %v1680_v20 }
 0x1ec   :  { %v465_v0 = vpop.xlane.xlu2 %464  ;;  %v548_v1 = vpop.xlane.xlu1 %547 }
 0x1ed   :  { %v576_v24 = vperm.slane %v548_v1, %v1680_v20  ;;  %v495_v40 = vperm.slane %v465_v0, %v1680_v20 }
 0x1ef   :  { %v583_v32 = vsel %vm502_vm13, %v576_v24, %v575_v27  ;;  %v503_v51 = vsel %vm502_vm13, %v495_v40, %v494_v45 }
 0x1f4   :  { %v468_v2 = vpop.xlane.xlu2 %467  ;;  %v551_v3 = vpop.xlane.xlu1 %550 }
 0x1f5   :  { %v577_v26 = vperm.slane %v551_v3, %v1680_v20  ;;  %v496_v43 = vperm.slane %v468_v2, %v1680_v20 }
 0x1f7   :  { %v584_v34 = vsel %vm504_vm14, %v577_v26, %v583_v32  ;;  %v505_v23 = vsel %vm504_vm14, %v496_v43, %v503_v51 }
 0x1fc   :  { %v554_v4 = vpop.xlane.xlu2 %553  ;;  %v471_v13 = vpop.xlane.xlu1 %470 }
 0x1fd   :  { %v578_v28 = vperm.slane %v554_v4, %v1680_v20  ;;  %v497_v46 = vperm.slane %v471_v13, %v1680_v20  ;;  %v1430_v4 = vmov 0.0  }
 0x1fe   :  { %v1723_v13 = vsel %vm215_vm8, 1.0, %v1430_v4 }
 0x1ff   :  { %v585_v37 = vsel %vm506_vm15, %v578_v28, %v584_v34  ;;  %v507_v55 = vsel %vm506_vm15, %v497_v46, %v505_v23 }
 0x204   :  { %v557_v14 = vpop.xlane.xlu2 %556 }
 0x205   :  { %v579_v31 = vperm.slane %v557_v14, %v1680_v20 }
 0x207   :  { %v586_v38 = vsel %vm508_vm0, %v579_v31, %v585_v37  ;;  %v694_v37 = vld [vmem:[%s1899_s12 + $0x8] sm:$0xff] }
 0x208   :  { %713 = vmatpush.msrb.mxu3 %v694_v37 }
 0x20c   :  { %v474_v29 = vpop.xlane.xlu2 %473  ;;  %v560_v19 = vpop.xlane.xlu1 %559 }
 0x20d   :  { %v580_v33 = vperm.slane %v560_v19, %v1680_v20  ;;  %v498_v49 = vperm.slane %v474_v29, %v1680_v20 }
 0x20f   :  { %v587_v41 = vsel %vm510_vm4, %v580_v33, %v586_v38  ;;  %v509_v56 = vsel %vm508_vm0, %v498_v49, %v507_v55 }
 0x214   :  { %v477_v22 = vpop.xlane.xlu1 %476  ;;  %v563_v25 = vpop.xlane.xlu2 %562 }
 0x215   :  { %v581_v35 = vperm.slane %v563_v25, %v1680_v20  ;;  %v499_v52 = vperm.slane %v477_v22, %v1680_v20  ;;  %v719_v25 = vld [vmem:[%s1901_s14] sm:$0x7] }
 0x216   :  { %1089 = vmatpush.msk.msrb.mxu0 %vm340_vm2, %v719_v25 }
 0x217   :  { %v588_v44 = vsel %vm512_vm6, %v581_v35, %v587_v41  ;;  %v511_v58 = vsel %vm510_vm4, %v499_v52, %v509_v56  ;;  %v1120_v52 = vld [vmem:[#allocation16] ss:$0 sm:$0xff] }
 0x21c   :  { %v566_v39 = vpop.xlane.xlu1 %565  ;;  %v480_v47 = vpop.xlane.xlu2 %479 }
 0x21d   :  { %v582_v42 = vperm.slane %v566_v39, %v1680_v20  ;;  %v500_v54 = vperm.slane %v480_v47, %v1680_v20 }
 0x21f   :  { %v589_v48 = vsel %vm514_vm7, %v582_v42, %v588_v44  ;;  %v513_v60 = vsel %vm512_vm6, %v500_v54, %v511_v58 }
 0x220   :  { %v591_v50 = vsel %vm215_vm8, %v589_v48, -1e+30  ;;  %v1119_v48 = vld [vmem:[#allocation15] ss:$0 sm:$0xff] }
 0x221   :  { %v592_v53 = vsel %vm518_vm9, %v591_v50, -inf }
 0x222   :  { %593 = vmax.xlane.f32.xlu2 %v592_v53 }
 0x224   :  { %v483_v57 = vpop.xlane.xlu1 %482 }
 0x225   :  { %v501_v59 = vperm.slane %v483_v57, %v1680_v20 }
 0x227   :  { %v515_v61 = vsel %vm514_vm7, %v501_v59, %v513_v60 }
 0x228   :  { %v517_v16 = vsel %vm215_vm8, %v515_v61, -1e+30 }
 0x229   :  { %v519_v62 = vsel %vm518_vm9, %v517_v16, -inf }
 0x22a   :  { %520 = vmax.xlane.f32.xlu1 %v519_v62 }
 0x295   :  { %v594_v63 = vpop.xlane.xlu2 %593 }
 0x296   :  { %v595_v0 = vsub.f32 %v591_v50, %v594_v63 }
 0x298   :  { %v596_v1 = vmul.f32 1.442695, %v595_v0 }
 0x29a   :  { %1123 = vpow2.f32 %v596_v1 }
 0x29d   :  { %v521_v2 = vpop.xlane.xlu1 %520 }
 0x29e   :  { %v522_v3 = vsub.f32 %v517_v16, %v521_v2  ;;  %v1786_v16 = vperm.slane %v828_v15, 0 }
 0x2a0   :  { %v1124_v14 = vpop.eup %1123  ;;  %v523_v29 = vmul.f32 1.442695, %v522_v3 }
 0x2a1   :  { %v598_v19 = vmul.f32 %v1124_v14, %v1723_v13 }
 0x2a2   :  { %1125 = vpow2.f32 %v523_v29 }
 0x2a3   :  { %v599_v30 = vsel %vm518_vm9, %v598_v19, 0.0 }
 0x2a4   :  { %600 = vadd.xlane.f32.xlu2 %v599_v30 }
 0x2a8   :  { %v1126_v21 = vpop.eup %1125 }
 0x2a9   :  { %v525_v22 = vmul.f32 %v1126_v21, %v1723_v13  ;;  %v1792_v21 = vperm.slane %v828_v15, 1 }
 0x2ab   :  { %v526_v24 = vsel %vm518_vm9, %v525_v22, 0.0 }
 0x2ac   :  { %527 = vadd.xlane.f32.xlu1 %v526_v24 }
 0x317   :  { %v601_v26 = vpop.xlane.xlu2 %600 }
 0x318   :  { %v602_v27 = vmax.f32 %v601_v26, 1e-20 }
 0x31a   :  { %1127 = vrcp.f32 %v602_v27 }
 0x31f   :  { %v528_v28 = vpop.xlane.xlu1 %527 }
 0x320   :  { %v1128_v31 = vpop.eup %1127  ;;  %v529_v32 = vmax.f32 %v528_v28, 1e-20 }
 0x321   :  { %v604_v33 = vmul.f32 %v1128_v31, %v598_v19 }
 0x322   :  { %1129 = vrcp.f32 %v529_v32 }
 0x323   :  { %1084 = vmatmul.msk.f32.vlgmr.msra.gmra.mxu3 %vm518_vm9, %v604_v33 }
 0x328   :  { %v1130_v34 = vpop.eup %1129 }
 0x329   :  { %v531_v35 = vmul.f32 %v1130_v34, %v525_v22 }
 0x32b   :  { %1085 = vmatmul.msk.f32.vlgmr.msra.gmra.mxu0 %vm518_vm9, %v531_v35 }
 0x333   :  { %1090 = vmatmul.msk.f32.vlgmr.msrb.gmra.mxu0 %vm315_vm3, %v1579_v5  ;;  %v665_v5 = vld [vmem:[%s1897_s10 + $0x8] sm:$0xff] }
 0x334   :  { %687 = vmatpush.msrb.mxu1 %v665_v5 }
 0x33b   :  { %1091 = vmatmul.msk.f32.gmra.mxu0 %vm315_vm3, %v1583_v6  ;;  %v693_v6 = vld [vmem:[%s1899_s12] sm:$0xff] }
 0x33c   :  { %714 = vmatpush.msrb.mxu3 %v693_v6 }
 0x33e   :  { %1103 = vmatpush.msk.msra.mxu3 %vm340_vm2, %v719_v25 }
 0x343   :  { %1092 = vmatmul.msk.f32.gmra.mxu0 %vm315_vm3, %v1587_v7  ;;  %v664_v7 = vld [vmem:[%s1897_s10] sm:$0xff] }
 0x344   :  { %688 = vmatpush.msrb.mxu1 %v664_v7 }
 0x34b   :  { %1093 = vmatmul.msk.f32.gmra.mxu0 %vm315_vm3, %v1591_v8  ;;  %v1118_v8 = vld [vmem:[#allocation13] ss:$0 sm:$0xff] }
 0x353   :  { %1094 = vmatmul.msk.f32.gmra.mxu0 %vm315_vm3, %v1595_v9 }
 0x3a6   :  { %v627_v9 = vpop.f32.mrf.mxu3 }
 0x3a8   :  { %v650_v38 = vpop.f32.mrf.mxu0 }
 0x3a9   :  { %v651_v39 = vadd.f32 %v650_v38, %v627_v9 }
 0x3ab   :  { %v657_v40 = vadd.f32 %v1118_v8, %v651_v39 }
 0x3ad   :  { %v659_v41 = vmin.f32 %v657_v40, 0.0  ;;  %vm658_vm10 = vcmp.gt.f32.partialorder %v657_v40, 0.0 }
 0x3af   :  { %v660_v42 = vmul.f32 1.442695, %v659_v41 }
 0x3b0   :  { %v740_v46 = vpop.f32.mrf.mxu0 }
 0x3b1   :  { %1131 = vpow2.f32 %v660_v42 }
 0x3b7   :  { %v1132_v43 = vpop.eup %1131 }
 0x3b8   :  { %v1086_v44 = vadd.f32 -1.0, %v1132_v43  ;;  %v743_v47 = vpop.f32.mrf.mxu0 }
 0x3ba   :  { %v663_v45 = vsel %vm658_vm10, %v657_v40, %v1086_v44 }
 0x3bb   :  { %1087 = vmatmul.msk.f32.vlgmr.msrb.gmra.mxu1 %vm459_vm5, %v663_v45  ;;  %1088 = vmatmul.msk.f32.vlgmr.msrb.gmra.mxu3 %vm459_vm5, %v663_v45 }
 0x3c0   :  { %v746_v53 = vpop.f32.mrf.mxu0 }
 0x3c3   :  { %1095 = vmatmul.msk.f32.vlgmr.msra.gmra.mxu3 %vm315_vm3, %v1599_v10 }
 0x3c8   :  { %v749_v63 = vpop.f32.mrf.mxu0 }
 0x3cb   :  { %1096 = vmatmul.msk.f32.gmra.mxu3 %vm315_vm3, %v1603_v11 }
 0x3d0   :  { %v752_v8 = vpop.f32.mrf.mxu0 }
 0x3d3   :  { %1097 = vmatmul.msk.f32.gmra.mxu3 %vm315_vm3, %v1607_v12 }
 0x438   :  { %v690_v49 = vpop.f32.mrf.mxu1 }
 0x439   :  { %v1766_v50 = vadd.f32 %v1119_v48, %v690_v49 }
 0x43b   :  { %v972_v51 = vmul.f32 %v1766_v50, %v605_v17  ;;  %v900_v10 = vmul.f32 %v1766_v50, %v532_v18 }
 0x43d   :  { %991 = vmatpush.msra.mxu1 %v972_v51  ;;  %1014 = vmatpush.msrb.mxu3 %v900_v10 }
 0x43e   :  { %v716_v11 = vpop.f32.mrf.mxu3 }
 0x43f   :  { %v1774_v12 = vadd.f32 %v1120_v52, %v716_v11 }
 0x441   :  { %v772_v23 = vperm.slane %v1774_v12, 0  ;;  %v765_v54 = vrot.slane %v1774_v12, 1  ;;  %v767_v55 = vrot.slane %v1774_v12, 3  ;;  %v766_v56 = vrot.slane %v1774_v12, 2 }
 0x442   :  { %v769_v57 = vrot.slane %v1774_v12, 5  ;;  %v768_v29 = vrot.slane %v1774_v12, 4  ;;  %v770_v10 = vrot.slane %v1774_v12, 6  ;;  %v771_v11 = vrot.slane %v1774_v12, 7 }
 0x443   :  { %v788_v17 = vadd.f32 %v772_v23, %v1766_v50  ;;  %v773_v18 = vperm.slane %v765_v54, 0  ;;  %v775_v58 = vperm.slane %v767_v55, 0  ;;  %v774_v61 = vperm.slane %v766_v56, 0 }
 0x444   :  { %v777_v2 = vperm.slane %v769_v57, 0  ;;  %v776_v32 = vperm.slane %v768_v29, 0  ;;  %v778_v23 = vperm.slane %v770_v10, 0  ;;  %v779_v56 = vperm.slane %v771_v11, 0 }
 0x445   :  { %v796_v59 = vadd.f32 %v788_v17, %v740_v46  ;;  %v789_v60 = vadd.f32 %v773_v18, %v1766_v50  ;;  %v791_v62 = vadd.f32 %v775_v58, %v1766_v50  ;;  %v790_v14 = vadd.f32 %v774_v61, %v1766_v50 }
 0x446   :  { %v793_v22 = vadd.f32 %v777_v2, %v1766_v50  ;;  %v755_v27 = vpop.f32.mrf.mxu3  ;;  %v792_v6 = vadd.f32 %v776_v32, %v1766_v50  ;;  %v794_v17 = vadd.f32 %v778_v23, %v1766_v50 }
 0x447   :  { %vm804_vm2 = vcmp.gt.f32.partialorder %v796_v59, 0.0  ;;  %v812_v0 = vmul.f32 0.2, %v796_v59  ;;  %v797_v1 = vadd.f32 %v789_v60, %v743_v47  ;;  %v799_v3 = vadd.f32 %v791_v62, %v749_v63 }
 0x448   :  { %v798_v31 = vadd.f32 %v790_v14, %v746_v53  ;;  %v801_v34 = vadd.f32 %v793_v22, %v755_v27  ;;  %v800_v40 = vadd.f32 %v792_v6, %v752_v8 }
 0x449   :  { %v820_v4 = vsel %vm804_vm2, %v796_v59, %v812_v0  ;;  %vm805_vm3 = vcmp.gt.f32.partialorder %v797_v1, 0.0  ;;  %v813_v30 = vmul.f32 0.2, %v797_v1  ;;  %v815_v26 = vmul.f32 0.2, %v799_v3 }
 0x44a   :  { %v830_v19 = vmul.f32 %v1786_v16, %v820_v4  ;;  %vm807_vm11 = vcmp.gt.f32.partialorder %v799_v3, 0.0  ;;  %v902_v35 = vmul.f32 %v1792_v21, %v820_v4  ;;  %v814_v5 = vmul.f32 0.2, %v798_v31 }
 0x44b   :  { %v821_v25 = vsel %vm805_vm3, %v797_v1, %v813_v30  ;;  %v823_v37 = vsel %vm807_vm11, %v799_v3, %v815_v26  ;;  %vm806_vm12 = vcmp.gt.f32.partialorder %v798_v31, 0.0  ;;  %v817_v9 = vmul.f32 0.2, %v801_v34 }
 0x44c   :  { %v838_v24 = vsel %vm459_vm5, %v830_v19, 0.0  ;;  %v831_v28 = vmul.f32 %v1786_v16, %v821_v25  ;;  %v833_v7 = vmul.f32 %v1786_v16, %v823_v37  ;;  %v910_v38 = vsel %vm459_vm5, %v902_v35, 0.0 }
 0x44d   :  { %839 = vadd.xlane.f32.xlu2 %v838_v24  ;;  %vm809_vm10 = vcmp.gt.f32.partialorder %v801_v34, 0.0  ;;  %v822_v39 = vsel %vm806_vm12, %v798_v31, %v814_v5  ;;  %v816_v44 = vmul.f32 0.2, %v800_v40  ;;  %vm808_vm2 = vcmp.gt.f32.partialorder %v800_v40, 0.0 }
 0x44e   :  { %v841_v33 = vsel %vm459_vm5, %v831_v28, 0.0  ;;  %v847_v41 = vsel %vm459_vm5, %v833_v7, 0.0  ;;  %v832_v42 = vmul.f32 %v1786_v16, %v822_v39  ;;  %v825_v43 = vsel %vm809_vm10, %v801_v34, %v817_v9  ;;  %v758_v51 = vpop.f32.mrf.mxu3 }
 0x44f   :  { %842 = vadd.xlane.f32.xlu1 %v841_v33  ;;  %v835_v45 = vmul.f32 %v1786_v16, %v825_v43  ;;  %v824_v47 = vsel %vm808_vm2, %v800_v40, %v816_v44  ;;  %v903_v52 = vmul.f32 %v1792_v21, %v821_v25  ;;  %v904_v55 = vmul.f32 %v1792_v21, %v822_v39 }
 0x450   :  { %v844_v46 = vsel %vm459_vm5, %v832_v42, 0.0  ;;  %v834_v49 = vmul.f32 %v1786_v16, %v824_v47  ;;  %v905_v15 = vmul.f32 %v1792_v21, %v823_v37  ;;  %v802_v57 = vadd.f32 %v794_v17, %v758_v51 }
 0x451   :  { %v853_v48 = vsel %vm459_vm5, %v835_v45, 0.0  ;;  %v913_v54 = vsel %vm459_vm5, %v903_v52, 0.0  ;;  %v916_v18 = vsel %vm459_vm5, %v904_v55, 0.0  ;;  %v795_v59 = vadd.f32 %v779_v56, %v1766_v50 }
 0x452   :  { %v850_v53 = vsel %vm459_vm5, %v834_v49, 0.0  ;;  %v919_v12 = vsel %vm459_vm5, %v905_v15, 0.0  ;;  %v906_v61 = vmul.f32 %v1792_v21, %v824_v47  ;;  %v818_v62 = vmul.f32 0.2, %v802_v57 }
 0x453   :  { %vm810_vm3 = vcmp.gt.f32.partialorder %v802_v57, 0.0  ;;  %v907_v63 = vmul.f32 %v1792_v21, %v825_v43 }
 0x454   :  { %v922_v1 = vsel %vm459_vm5, %v906_v61, 0.0  ;;  %v826_v2 = vsel %vm810_vm3, %v802_v57, %v818_v62 }
 0x455   :  { %911 = vadd.xlane.f32.xlu2 %v910_v38  ;;  %v925_v3 = vsel %vm459_vm5, %v907_v63, 0.0  ;;  %v836_v50 = vmul.f32 %v1786_v16, %v826_v2  ;;  %v908_v30 = vmul.f32 %v1792_v21, %v826_v2 }
 0x456   :  { %v761_v58 = vpop.f32.mrf.mxu3 }
 0x457   :  { %848 = vadd.xlane.f32.xlu1 %v847_v41  ;;  %v803_v60 = vadd.f32 %v795_v59, %v761_v58  ;;  %v856_v29 = vsel %vm459_vm5, %v836_v50, 0.0  ;;  %v928_v24 = vsel %vm459_vm5, %v908_v30, 0.0 }
 0x459   :  { %v819_v0 = vmul.f32 0.2, %v803_v60  ;;  %vm811_vm11 = vcmp.gt.f32.partialorder %v803_v60, 0.0 }
 0x45b   :  { %v827_v4 = vsel %vm811_vm11, %v803_v60, %v819_v0 }
 0x45c   :  { %v837_v14 = vmul.f32 %v1786_v16, %v827_v4  ;;  %v909_v22 = vmul.f32 %v1792_v21, %v827_v4 }
 0x45d   :  { %845 = vadd.xlane.f32.xlu2 %v844_v46 }
 0x45e   :  { %v859_v19 = vsel %vm459_vm5, %v837_v14, 0.0  ;;  %v931_v25 = vsel %vm459_vm5, %v909_v22, 0.0 }
 0x45f   :  { %854 = vadd.xlane.f32.xlu1 %v853_v48 }
 0x465   :  { %851 = vadd.xlane.f32.xlu2 %v850_v53 }
 0x467   :  { %914 = vadd.xlane.f32.xlu1 %v913_v54 }
 0x46d   :  { %917 = vadd.xlane.f32.xlu2 %v916_v18 }
 0x46f   :  { %920 = vadd.xlane.f32.xlu1 %v919_v12 }
 0x475   :  { %923 = vadd.xlane.f32.xlu2 %v922_v1 }
 0x477   :  { %926 = vadd.xlane.f32.xlu1 %v925_v3 }
 0x47d   :  { %857 = vadd.xlane.f32.xlu2 %v856_v29 }
 0x47f   :  { %860 = vadd.xlane.f32.xlu1 %v859_v19 }
 0x485   :  { %929 = vadd.xlane.f32.xlu2 %v928_v24 }
 0x487   :  { %932 = vadd.xlane.f32.xlu1 %v931_v25 }
 0x4c0   :  { %v840_v26 = vpop.xlane.xlu2 %839 }
 0x4c1   :  { %v870_v6 = vperm.slane %v840_v26, %v1680_v20 }
 0x4c2   :  { %v843_v27 = vpop.xlane.xlu1 %842 }
 0x4c3   :  { %v871_v5 = vperm.slane %v843_v27, %v1680_v20 }
 0x4c5   :  { %v878_v8 = vsel %vm502_vm13, %v871_v5, %v870_v6 }
 0x4c8   :  { %v912_v28 = vpop.xlane.xlu2 %911 }
 0x4c9   :  { %v942_v45 = vperm.slane %v912_v28, %v1680_v20 }
 0x4ca   :  { %v849_v16 = vpop.xlane.xlu1 %848 }
 0x4cb   :  { %v873_v40 = vperm.slane %v849_v16, %v1680_v20 }
 0x4d0   :  { %v846_v31 = vpop.xlane.xlu2 %845 }
 0x4d1   :  { %v872_v21 = vperm.slane %v846_v31, %v1680_v20 }
 0x4d2   :  { %v855_v32 = vpop.xlane.xlu1 %854 }
 0x4d3   :  { %v879_v9 = vsel %vm504_vm14, %v872_v21, %v878_v8  ;;  %v875_v46 = vperm.slane %v855_v32, %v1680_v20 }
 0x4d4   :  { %v880_v41 = vsel %vm506_vm15, %v873_v40, %v879_v9  ;;  %v1122_v40 = vld [vmem:[%s1906_s19] ss:$0 sm:$0xff] }
 0x4d8   :  { %v852_v33 = vpop.xlane.xlu2 %851 }
 0x4d9   :  { %v874_v38 = vperm.slane %v852_v33, %v1680_v20 }
 0x4da   :  { %v915_v34 = vpop.xlane.xlu1 %914 }
 0x4db   :  { %v943_v42 = vperm.slane %v915_v34, %v1680_v20  ;;  %v881_v43 = vsel %vm508_vm0, %v874_v38, %v880_v41  ;;  %v1030_v34 = vld [vmem:[%s1905_s18] sm:$0xff] }
 0x4dc   :  { %v882_v10 = vsel %vm510_vm4, %v875_v46, %v881_v43 }
 0x4dd   :  { %v950_v49 = vsel %vm502_vm13, %v943_v42, %v942_v45 }
 0x4e0   :  { %v918_v35 = vpop.xlane.xlu2 %917 }
 0x4e1   :  { %v944_v44 = vperm.slane %v918_v35, %v1680_v20  ;;  %v1121_v35 = vld [vmem:[#allocation18] ss:$0 sm:$0xff] }
 0x4e2   :  { %v921_v37 = vpop.xlane.xlu1 %920 }
 0x4e3   :  { %v945_v51 = vperm.slane %v921_v37, %v1680_v20  ;;  %v951_v52 = vsel %vm504_vm14, %v944_v44, %v950_v49 }
 0x4e5   :  { %v952_v55 = vsel %vm506_vm15, %v945_v51, %v951_v52 }
 0x4e8   :  { %v924_v7 = vpop.xlane.xlu2 %923 }
 0x4e9   :  { %v946_v53 = vperm.slane %v924_v7, %v1680_v20 }
 0x4ea   :  { %v927_v39 = vpop.xlane.xlu1 %926 }
 0x4eb   :  { %v947_v56 = vperm.slane %v927_v39, %v1680_v20  ;;  %v953_v15 = vsel %vm508_vm0, %v946_v53, %v952_v55 }
 0x4ed   :  { %v954_v12 = vsel %vm510_vm4, %v947_v56, %v953_v15 }
 0x4f0   :  { %v858_v47 = vpop.xlane.xlu2 %857 }
 0x4f1   :  { %v876_v48 = vperm.slane %v858_v47, %v1680_v20 }
 0x4f2   :  { %v861_v11 = vpop.xlane.xlu1 %860 }
 0x4f3   :  { %v883_v23 = vsel %vm512_vm6, %v876_v48, %v882_v10  ;;  %v877_v54 = vperm.slane %v861_v11, %v1680_v20 }
 0x4f5   :  { %v884_v17 = vsel %vm514_vm7, %v877_v54, %v883_v23 }
 0x4f6   :  { %v886_v18 = vsel %vm215_vm8, %v884_v17, -1e+30 }
 0x4f7   :  { %v887_v57 = vsel %vm518_vm9, %v886_v18, -inf }
 0x4f8   :  { %v930_v58 = vpop.xlane.xlu2 %929  ;;  %888 = vmax.xlane.f32.xlu2 %v887_v57 }
 0x4f9   :  { %v948_v59 = vperm.slane %v930_v58, %v1680_v20 }
 0x4fa   :  { %v933_v60 = vpop.xlane.xlu1 %932 }
 0x4fb   :  { %v955_v61 = vsel %vm512_vm6, %v948_v59, %v954_v12  ;;  %v949_v62 = vperm.slane %v933_v60, %v1680_v20 }
 0x4fd   :  { %v956_v63 = vsel %vm514_vm7, %v949_v62, %v955_v61 }
 0x4fe   :  { %v958_v0 = vsel %vm215_vm8, %v956_v63, -1e+30 }
 0x4ff   :  { %v959_v1 = vsel %vm518_vm9, %v958_v0, -inf }
 0x500   :  { %960 = vmax.xlane.f32.xlu1 %v959_v1 }
 0x56b   :  { %v889_v2 = vpop.xlane.xlu2 %888 }
 0x56c   :  { %v890_v3 = vsub.f32 %v886_v18, %v889_v2 }
 0x56e   :  { %v891_v50 = vmul.f32 1.442695, %v890_v3 }
 0x570   :  { %1133 = vpow2.f32 %v891_v50 }
 0x573   :  { %v961_v4 = vpop.xlane.xlu1 %960 }
 0x574   :  { %v962_v14 = vsub.f32 %v958_v0, %v961_v4 }
 0x576   :  { %v1134_v29 = vpop.eup %1133  ;;  %v963_v19 = vmul.f32 1.442695, %v962_v14 }
 0x577   :  { %v893_v30 = vmul.f32 %v1134_v29, %v1723_v13 }
 0x578   :  { %1135 = vpow2.f32 %v963_v19 }
 0x579   :  { %v894_v20 = vsel %vm518_vm9, %v893_v30, 0.0 }
 0x57a   :  { %895 = vadd.xlane.f32.xlu2 %v894_v20 }
 0x57e   :  { %v1136_v22 = vpop.eup %1135 }
 0x57f   :  { %v965_v36 = vmul.f32 %v1136_v22, %v1723_v13  ;;  %v1031_v13 = vld [vmem:[%s1905_s18 + $0x8] sm:$0xff] }
 0x580   :  { %1053 = vmatpush.msrb.mxu1 %v1031_v13 }
 0x581   :  { %v966_v24 = vsel %vm518_vm9, %v965_v36, 0.0 }
 0x582   :  { %967 = vadd.xlane.f32.xlu1 %v966_v24  ;;  %1054 = vmatpush.msrb.mxu1 %v1030_v34 }
 0x5ed   :  { %v896_v25 = vpop.xlane.xlu2 %895 }
 0x5ee   :  { %v897_v26 = vmax.f32 %v896_v25, 1e-20 }
 0x5f0   :  { %1137 = vrcp.f32 %v897_v26 }
 0x5f5   :  { %v968_v27 = vpop.xlane.xlu1 %967 }
 0x5f6   :  { %v1138_v28 = vpop.eup %1137  ;;  %v969_v16 = vmax.f32 %v968_v27, 1e-20 }
 0x5f7   :  { %v899_v31 = vmul.f32 %v1138_v28, %v893_v30 }
 0x5f8   :  { %1139 = vrcp.f32 %v969_v16 }
 0x5f9   :  { %1099 = vmatmul.msk.f32.vlgmr.msrb.gmra.mxu3 %vm518_vm9, %v899_v31 }
 0x5fe   :  { %v1140_v32 = vpop.eup %1139 }
 0x5ff   :  { %v971_v33 = vmul.f32 %v1140_v32, %v965_v36 }
 0x601   :  { %1098 = vmatmul.msk.f32.vlgmr.msra.gmra.mxu1 %vm518_vm9, %v971_v33 }
 0x67c   :  { %v1016_v37 = vpop.f32.mrf.mxu3 }
 0x67e   :  { %v993_v5 = vpop.f32.mrf.mxu1 }
 0x67f   :  { %v1017_v21 = vadd.f32 %v1016_v37, %v993_v5 }
 0x681   :  { %v1023_v6 = vadd.f32 %v1121_v35, %v1017_v21 }
 0x683   :  { %v1025_v7 = vmin.f32 %v1023_v6, 0.0  ;;  %vm1024_vm13 = vcmp.gt.f32.partialorder %v1023_v6, 0.0 }
 0x685   :  { %v1026_v8 = vmul.f32 1.442695, %v1025_v7 }
 0x687   :  { %1141 = vpow2.f32 %v1026_v8 }
 0x68d   :  { %v1142_v9 = vpop.eup %1141 }
 0x68e   :  { %v1100_v38 = vadd.f32 -1.0, %v1142_v9 }
 0x690   :  { %v1029_v39 = vsel %vm1024_vm13, %v1023_v6, %v1100_v38 }
 0x691   :  { %1101 = vmatmul.msk.f32.vlgmr.msrb.gmra.mxu1 %vm459_vm5, %v1029_v39 }
 0x70e   :  { %v1056_v41 = vpop.f32.mrf.mxu1 }
 0x70f   :  { %v1057_v42 = vadd.f32 %v1122_v40, %v1056_v41 }
 0x711   :  { %1059 = vst.msk [vmem:[%s1907_s20] sm:$0xff] %vm258_vm1, %v1057_v42 }
 0x712   :  { %1064 = vsyncpa [#allocation3], 1 }
 0x713   :  { %1065 = vsyncpa [#allocation5], 1 }
 0x714   :  { %1066 = vsyncpa [#allocation8], 1 }
 0x715   :  { %1067 = vsyncpa [#allocation11], 1 }
 0x716   :  { %1068 = vsyncpa [#allocation14], 1 }
 0x717   :  { %1069 = vsyncpa [#allocation17], 1 }

</bundles_post_ra>
